<compile_context>
chip_gen: v6e
topology: v6e:2x2x1
jax: 0.10.0
libtpu: 0.0.40
codegen_flags: <defaults>
</compile_context>

<pallas_src>
import jax
import jax.numpy as jnp
from jax.experimental import pallas as pl
from jax.experimental.pallas import tpu as pltpu

LANES = 128
SUBLANES = 8
_TILE = SUBLANES * LANES            # 1024-element alignment unit
_TARGET_BLOCK_ROWS = 8192           # 8192 x 128 x 4B = 4 MiB (f32) per block


def _make_loss_kernel(*, real: bool, block_rows: int, nacc: int,
                      nshard: int, inner: int, valid_rows_in_last: int,
                      mask_last: bool):
    """All arguments are static Python values baked into the kernel."""
    groups = block_rows // (nacc * SUBLANES)
    acc_rows = nacc * SUBLANES

    def kernel(x_ref, o_ref, acc_ref):
        c = pl.program_id(0)          # shard (TensorCore) index
        i = pl.program_id(1)          # streaming step within the shard

        @pl.when(i == 0)
        def _init():
            acc_ref[...] = jnp.zeros_like(acc_ref)

        xv = x_ref[...].astype(jnp.float32)
        # Sign folded statically: real -> relu(1 - x), fake -> relu(1 + x).
        if real:
            hinge = jnp.maximum(1.0 - xv, 0.0)
        else:
            hinge = jnp.maximum(1.0 + xv, 0.0)

        def accumulate(h):
            # Reshape groups whole (8,128) tiles (contiguous rows), so the
            # axis-0 sum is a set of `nacc` independent vreg-add chains
            # (pure VPU work, no cross-lane movement, no materialized temp).
            partial = h.reshape(groups, acc_rows, LANES).sum(axis=0)
            acc_ref[...] += partial

        if mask_last:
            # Only the globally-last block is partial; pay the iota/compare/
            # select cost on that single step, never on full blocks.
            is_last_block = jnp.logical_and(c == nshard - 1, i == inner - 1)

            @pl.when(jnp.logical_not(is_last_block))
            def _full():
                accumulate(hinge)

            @pl.when(is_last_block)
            def _partial():
                row_ids = jax.lax.broadcasted_iota(
                    jnp.int32, (block_rows, LANES), 0)
                accumulate(jnp.where(row_ids < valid_rows_in_last,
                                     hinge, 0.0))
        else:
            accumulate(hinge)

        @pl.when(i == inner - 1)
        def _fin():
            # Single cross-lane/sublane reduction per shard.
            o_ref[...] = jnp.sum(acc_ref[...])[None, None]

    return kernel


def nowcasting_loss(x: jax.Array, real_flag,
                    *, max_block_rows: int = _TARGET_BLOCK_ROWS) -> jax.Array:
    """Pallas TPU implementation of NowcastingLoss.forward(x, real_flag).

    `real_flag` must be a static Python/numpy bool (matches the PyTorch
    module, which tests `real_flag is True`); traced values are not supported.
    """
    real = bool(real_flag)
    total = x.size
    inv_total = 1.0 / float(total)

    flat = x.reshape(-1)                         # native dtype, no upcast
    aligned = (total // _TILE) * _TILE           # largest (8,128)-tile prefix

    # Ragged tail (< 1024 elements): tiny jnp reduction in the wrapper,
    # added (un-normalized) to the kernel partial sums.  No concatenate.
    if aligned != total:
        tail = flat[aligned:].astype(jnp.float32)
        tail = -tail if real else tail
        tail_sum = jnp.sum(jnp.maximum(1.0 + tail, 0.0))
    else:
        tail_sum = jnp.float32(0.0)

    if aligned == 0:                             # everything fit in the tail
        return (tail_sum * inv_total).astype(jnp.float32)

    rows = aligned // LANES                      # multiple of 8
    x2d = flat[:aligned].reshape(rows, LANES)

    block_rows = min(max_block_rows, rows)       # full dim or multiple of 8
    nblocks = pl.cdiv(rows, block_rows)
    nshard = 2 if (nblocks % 2 == 0) else 1      # dual-TC split (v7x)
    inner = nblocks // nshard
    partial_last = (rows % block_rows) != 0
    valid_rows_in_last = rows - (nblocks - 1) * block_rows

    # Independent partial accumulators to break the vadd dependency chain.
    if block_rows % (4 * SUBLANES) == 0:
        nacc = 4
    elif block_rows % (2 * SUBLANES) == 0:
        nacc = 2
    else:
        nacc = 1

    kernel = _make_loss_kernel(
        real=real, block_rows=block_rows, nacc=nacc, nshard=nshard,
        inner=inner, valid_rows_in_last=valid_rows_in_last,
        mask_last=partial_last)

    partials = pl.pallas_call(
        kernel,
        out_shape=jax.ShapeDtypeStruct((nshard, 1), jnp.float32),
        grid_spec=pltpu.PrefetchScalarGridSpec(
            num_scalar_prefetch=0,
            grid=(nshard, inner),
            in_specs=[pl.BlockSpec((block_rows, LANES),
                                   lambda c, i: (c * inner + i, 0))],
            out_specs=pl.BlockSpec((1, 1), lambda c, i: (c, 0)),
            scratch_shapes=[pltpu.VMEM((nacc * SUBLANES, LANES), jnp.float32)],
        ),
        compiler_params=pltpu.CompilerParams(
            dimension_semantics=("parallel", "arbitrary"),
            vmem_limit_bytes=32 * 1024 * 1024,
        ),
    )(x2d)

    return ((jnp.sum(partials) + tail_sum) * inv_total).astype(jnp.float32)


def _ref_loss(x, real_flag):
    xr = -x if real_flag else x
    return jnp.mean(jax.nn.relu(1.0 + xr.astype(jnp.float32)))


if __name__ == "__main__":
    key = jax.random.PRNGKey(0)
    k1, k2, k3, k4 = jax.random.split(key, 4)

    # 1) Primary: small discriminator-score-like tensor (aligned, 1 block).
    x = jax.random.normal(k1, (2, 4, 16, 16), dtype=jnp.float32)
    for flag in (False, True):
        got = nowcasting_loss(x, flag)
        jax.block_until_ready(got)
        assert jnp.allclose(got, _ref_loss(x, flag), atol=1e-6, rtol=1e-6)

    # 2) Ragged input (tail handled in wrapper, no pad/concat).
    x_ragged = jax.random.normal(k2, (2, 1, 300, 7), dtype=jnp.float32)  # 4200
    for flag in (False, True):
        got = nowcasting_loss(x_ragged, flag)
        jax.block_until_ready(got)
        assert jnp.allclose(got, _ref_loss(x_ragged, flag), atol=1e-5, rtol=1e-5)

    # 3) Pure-tail path (total < 1024 -> no kernel launch).
    x_tiny = jax.random.normal(k3, (3, 5, 7), dtype=jnp.float32)
    for flag in (False, True):
        got = nowcasting_loss(x_tiny, flag)
        jax.block_until_ready(got)
        assert jnp.allclose(got, _ref_loss(x_tiny, flag), atol=1e-6, rtol=1e-6)

    # 4) Multi-block, 2-shard grid with a partial (masked) last block.
    x_big = jax.random.normal(k4, (8, 8, 73, 64), dtype=jnp.float32)  # 2336 rows
    for flag in (False, True):
        got = nowcasting_loss(x_big, flag, max_block_rows=56)  # 42 blocks, 2 shards
        jax.block_until_ready(got)
        assert jnp.allclose(got, _ref_loss(x_big, flag), atol=1e-5, rtol=1e-5)

    # 5) Multi-block, single-shard (odd block count) with masked last block.
    for flag in (False, True):
        got = nowcasting_loss(x_big, flag, max_block_rows=64)  # 37 blocks
        jax.block_until_ready(got)
        assert jnp.allclose(got, _ref_loss(x_big, flag), atol=1e-5, rtol=1e-5)

    print("KERNEL_OK")
</pallas_src>

<mosaic_0001>
module attributes {stable_mosaic.version = 11 : i64} {
  func.func @kernel(%arg0: i32, %arg1: i32, %arg2: memref<16x128xf32, #tpu.memory_space<vmem>>, %arg3: memref<1x1xf32, #tpu.memory_space<vmem>>, %arg4: memref<16x128xf32, #tpu.memory_space<vmem>>) attributes {dimension_semantics = [#tpu.dimension_semantics<parallel>, #tpu.dimension_semantics<arbitrary>], iteration_bounds = array<i64: 1, 1>, scalar_prefetch = 0 : i64, scratch_operands = 1 : i64, tpu.core_type = #tpu.core_type<tc>, window_params = [{transform_indices = @transform_0, window_bounds = array<i64: 16, 128>}, {transform_indices = @transform_1, window_bounds = array<i64: 1, 1>}]} {
    %c0_i32 = arith.constant 0 : i32
    %0 = arith.cmpi eq, %arg1, %c0_i32 : i32
    %1 = arith.extui %0 : i1 to i32
    %c0_i32_0 = arith.constant 0 : i32
    %2 = arith.cmpi ne, %1, %c0_i32_0 : i32
    scf.if %2 {
      %cst_10 = arith.constant 0.000000e+00 : f32
      %16 = vector.broadcast %cst_10 : f32 to vector<16x128xf32>
      %c0_11 = arith.constant 0 : index
      %c0_12 = arith.constant 0 : index
      %17 = vector.load %arg4[%c0_11, %c0_12] : memref<16x128xf32, #tpu.memory_space<vmem>>, vector<16x128xf32>
      tpu.vector_store %arg4[%c0_11, %c0_12], %16 {strides = array<i32>} : memref<16x128xf32, #tpu.memory_space<vmem>>, vector<16x128xf32>,
    } else {
    }
    %c0 = arith.constant 0 : index
    %c0_1 = arith.constant 0 : index
    %3 = vector.load %arg2[%c0, %c0_1] : memref<16x128xf32, #tpu.memory_space<vmem>>, vector<16x128xf32>
    %cst = arith.constant 1.000000e+00 : f32
    %4 = vector.broadcast %cst : f32 to vector<16x128xf32>
    %5 = arith.addf %4, %3 : vector<16x128xf32>
    %cst_2 = arith.constant 0.000000e+00 : f32
    %6 = vector.broadcast %cst_2 : f32 to vector<16x128xf32>
    %7 = arith.maximumf %5, %6 : vector<16x128xf32>
    %8 = vector.shape_cast %7 : vector<16x128xf32> to vector<1x16x128xf32>
    %cst_3 = arith.constant dense<0.000000e+00> : vector<16x128xf32>
    %9 = vector.multi_reduction <add>, %8, %cst_3 [0] : vector<1x16x128xf32> to vector<16x128xf32>
    %c0_4 = arith.constant 0 : index
    %c0_5 = arith.constant 0 : index
    %10 = vector.load %arg4[%c0_4, %c0_5] : memref<16x128xf32, #tpu.memory_space<vmem>>, vector<16x128xf32>
    %11 = arith.addf %10, %9 : vector<16x128xf32>
    %c0_6 = arith.constant 0 : index
    %c0_7 = arith.constant 0 : index
    %12 = vector.load %arg4[%c0_6, %c0_7] : memref<16x128xf32, #tpu.memory_space<vmem>>, vector<16x128xf32>
    tpu.vector_store %arg4[%c0_6, %c0_7], %11 {strides = array<i32>} : memref<16x128xf32, #tpu.memory_space<vmem>>, vector<16x128xf32>,
    %c0_i32_8 = arith.constant 0 : i32
    %13 = arith.cmpi eq, %arg1, %c0_i32_8 : i32
    %14 = arith.extui %13 : i1 to i32
    %c0_i32_9 = arith.constant 0 : i32
    %15 = arith.cmpi ne, %14, %c0_i32_9 : i32
    scf.if %15 {
      %c0_10 = arith.constant 0 : index
      %c0_11 = arith.constant 0 : index
      %16 = vector.load %arg4[%c0_10, %c0_11] : memref<16x128xf32, #tpu.memory_space<vmem>>, vector<16x128xf32>
      %17 = vector.shape_cast %16 : vector<16x128xf32> to vector<1x16x128xf32>
      %cst_12 = arith.constant dense<0.000000e+00> : vector<1xf32>
      %18 = vector.multi_reduction <add>, %17, %cst_12 [1, 2] : vector<1x16x128xf32> to vector<1xf32>
      %19 = vector.shape_cast %18 : vector<1xf32> to vector<1x1x1xf32>
      %20 = vector.extract %19[0, 0, 0] : f32 from vector<1x1x1xf32>
      %21 = vector.broadcast %20 : f32 to vector<1x1xf32>
      %c0_13 = arith.constant 0 : index
      %c0_14 = arith.constant 0 : index
      %22 = vector.load %arg3[%c0_13, %c0_14] : memref<1x1xf32, #tpu.memory_space<vmem>>, vector<1x1xf32>
      tpu.vector_store %arg3[%c0_13, %c0_14], %21 {strides = array<i32>} : memref<1x1xf32, #tpu.memory_space<vmem>>, vector<1x1xf32>,
    } else {
    }
    return
  }
  func.func @transform_0(%arg0: i32, %arg1: i32) -> (i32, i32) {
    %c1_i32 = arith.constant 1 : i32
    %0 = arith.muli %arg0, %c1_i32 : i32
    %1 = arith.addi %0, %arg1 : i32
    %c0_i32 = arith.constant 0 : i32
    %c0_i32_0 = arith.constant 0 : i32
    return %1, %c0_i32 : i32, i32
  }
  func.func @transform_1(%arg0: i32, %arg1: i32) -> (i32, i32) {
    %c0_i32 = arith.constant 0 : i32
    %c0_i32_0 = arith.constant 0 : i32
    return %arg0, %c0_i32 : i32, i32
  }
}

</mosaic_0001>

<bundles_post_ra>
// kernel: tpu_custom_call.1
= control target key start
LH: loop header
LB: loop body
LE: loop exit
PB: predicated region body
PF: predicated region fallthrough
CT: control target
= control target key end

     0   :  { %6 = vsyncpa [#allocation4], 0  ;;  %s152_s0 = inlined_call_operand.hbm [shape: f32[16,128], index: 0, kind: input, shape index: {}]   ;;  %s153_s1 = inlined_call_operand.hbm [shape: f32[1,1], index: 1, kind: output, shape index: {}]  }
   0x1   :  { %7 = vsyncpa [#allocation5], 0  ;;  %s132_s6 = smov [#allocation3]  }
   0x2   :  { %s17_s7 = sshll.u32 %s132_s6, 4  ;;  %s18_s7 = int_to_ptr.vmem [resolvable:$true] %s17_s7 }
   0x3   :  { %s96_s8 = scalar_lea.vmem %s18_s7, 256  ;;  %p101_p1 = scmp.lt.s32.totalorder %s18_s7, %s18_s7 }
   0x4   :  { %p97_p0 = scmp.ne.s32.totalorder %s18_s7, %s96_s8  ;;  %p102_p2 = scmp.lt.s32.totalorder %s96_s8, %s96_s8 }
   0x6   :  { %p103_p3 = por %p102_p2, %p101_p1 }
   0x8   :  { %p104_p4 = pnand %p103_p3, %p97_p0 }
   0xa   :  { %107 = shalt.err (!%p104_p4)
}
   0xb   :  { %s133_s9 = smov 128   ;;  %s134_s10 = smov 8  }
   0xc   :  { %23 = dma.hbm_to_vmem [thread:$0]  %s152_s0, 256, %s18_s7, [#allocation4], %s133_s9, %s133_s9, %s134_s10  }
   0xd   :  { %128 = dma.done.wait [#allocation4], 256  }
   0xe   :  { %129 = vsyncadd [#allocation4], 4294967040  ;;  %v35_v0 = vld [vmem:[#allocation3] sm:$0xff]  ;;  %v36_v1 = vld [vmem:[#allocation3 + $0x8] sm:$0xff]  ;;  %s135_s13 = smov [#allocation6]   ;;  %vm65_vm0 = vcmask 0  }
   0xf   :  { %v37_v2 = vadd.f32 1.0, %v35_v0  ;;  %v38_v3 = vadd.f32 1.0, %v36_v1  ;;  %s73_s0 = sshll.u32 %s135_s13, 4  ;;  %s74_s0 = int_to_ptr.vmem [resolvable:$true] %s73_s0 }
  0x10   :  { %s108_s15 = scalar_lea.vmem %s74_s0, 16  ;;  %s112_s16 = scalar_lea.vmem %s74_s0, 32 }
  0x11   :  { %v39_v4 = vmax.f32 %v37_v2, 0.0  ;;  %v40_v5 = vmax.f32 %v38_v3, 0.0  ;;  %p109_p5 = scmp.ne.s32.totalorder %s74_s0, %s108_s15  ;;  %p113_p6 = scmp.lt.s32.totalorder %s74_s0, %s74_s0 }
  0x12   :  { %p114_p7 = scmp.lt.s32.totalorder %s112_s16, %s108_s15 }
  0x13   :  { %v54_v6 = vadd.f32 %v40_v5, %v39_v4 }
  0x14   :  { %p115_p8 = por %p114_p7, %p113_p6 }
  0x15   :  { %55 = vadd.xlane.f32.xlu0 %v54_v6 }
  0x16   :  { %p116_p9 = pnand %p115_p8, %p109_p5 }
  0x9e   :  { %v56_v7 = vpop.xlane.xlu0 %55 }
  0x9f   :  { %v57_v8 = vrot.slane %v56_v7, 4 }
  0xa1   :  { %v58_v9 = vadd.f32 %v57_v8, %v56_v7 }
  0xa3   :  { %v59_v10 = vrot.slane %v58_v9, 2 }
  0xa5   :  { %v60_v11 = vadd.f32 %v59_v10, %v58_v9 }
  0xa7   :  { %v61_v12 = vrot.slane %v60_v11, 1 }
  0xa9   :  { %v62_v13 = vadd.f32 %v61_v12, %v60_v11 }
  0xab   :  { %82 = vpush %v62_v13 }
  0xdc   :  { %s83_s14 = spop %82 }
  0xdd   :  { %v64_v14 = vstv %s83_s14 }
  0xde   :  { %66 = vst.msk [vmem:[#allocation6] sm:$0x1] %vm65_vm0, %v64_v14 }
  0xdf   :  { %119 = shalt.err (!%p116_p9)
}
  0xe0   :  { %76 = dma.vmem_to_hbm [thread:$0]  %s74_s0, 16, %s153_s1, [#allocation5]  }
  0xe1   :  { %130 = dma.done.wait [#allocation5], 16  }
  0xe2   :  { %131 = vsyncadd [#allocation5], 4294967280 }
  0xe3   :  { %80 = vsyncpa [#allocation4], 1 }
  0xe4   :  { %81 = vsyncpa [#allocation5], 1 }

</bundles_post_ra>
